<compile_context>
chip_gen: v7x
topology: tpu7x:2x2x1
jax: 0.10.0
libtpu: 0.0.40
codegen_flags: <defaults>
</compile_context>

<pallas_src>
import math
import functools

import jax
import jax.numpy as jnp
from jax.experimental import pallas as pl
from jax.experimental.pallas import tpu as pltpu


def _round_up(n, m):
    return ((n + m - 1) // m) * m


def _vib_kernel(x_ref, wenc_ref, benc_ref, wd_ref, bd_ref, epsm_ref, out_ref, *, Kp):
    x = x_ref[...]                                                    # [TB, in] bf16

    # Fused encoder: one bf16 MXU matmul -> [TB, 2*Kp] f32 acc; lane-aligned split at Kp.
    enc = (jnp.dot(x, wenc_ref[...], preferred_element_type=jnp.float32)
           + benc_ref[...])
    mu = enc[:, :Kp]                                                  # [TB, Kp]
    t = enc[:, Kp:]                                                   # encoder_std pre-act

    # sigma = softplus(relu(t) - 5), branch-free:
    #   softplus(p) = max(p, 0) + log1p(exp(-|p|)),  and max(relu(t)-5, 0) == max(t-5, 0)
    pre = jnp.maximum(t, 0.0) - 5.0                                   # needed for |pre|
    sigma = jnp.maximum(t - 5.0, 0.0) + jnp.log1p(jnp.exp(-jnp.abs(pre)))

    # Collapsed reparameterized sampling + decoder mean: one bf16 matmul, one bias add.
    z = (mu + sigma * epsm_ref[...].astype(jnp.float32)).astype(jnp.bfloat16)
    out_ref[...] = (jnp.dot(z, wd_ref[...], preferred_element_type=jnp.float32)
                    + bd_ref[...])                                    # [TB, Op] f32


def prepare_vib_params(params):
    """One-time weight prep: transpose, fuse encoders, zero-pad lanes to 128, cast bf16.

    Invariant: wenc/benc columns K..Kp (both halves) AND wd rows K..Kp are zero.  The
    padded lanes of z are non-zero (sigma_pad = softplus(-5)); they drop out of the
    result only because wd's padded rows are zero.  Keep them zero.
    """
    K, input_size = params["wm"].shape
    output_size = params["wd"].shape[0]
    Kp = _round_up(K, 128)
    Op = _round_up(output_size, 128)

    wenc = jnp.zeros((input_size, 2 * Kp), jnp.float32)
    wenc = wenc.at[:, :K].set(params["wm"].T)
    wenc = wenc.at[:, Kp:Kp + K].set(params["ws"].T)
    benc = jnp.zeros((1, 2 * Kp), jnp.float32)
    benc = benc.at[:, :K].set(params["bm"])
    benc = benc.at[:, Kp:Kp + K].set(params["bs"])

    wd = jnp.zeros((Kp, Op), jnp.float32)
    wd = wd.at[:K, :output_size].set(params["wd"].T)
    bd = jnp.zeros((1, Op), jnp.float32)
    bd = bd.at[:, :output_size].set(params["bd"])

    return {
        "wenc": wenc.astype(jnp.bfloat16),   # MXU operands in bf16
        "wd": wd.astype(jnp.bfloat16),
        "benc": benc, "bd": bd,              # biases stay f32 (added to the f32 accum)
        "K": K, "Kp": Kp, "input_size": input_size,
        "output_size": output_size, "Op": Op,
    }


def _device_kind():
    try:
        return jax.devices()[0].device_kind.lower()
    except Exception:
        return ""


def _pick_batch_tile(B, kind):
    """Generation-aware batch tile.

    v7x: 2 TensorCores + 64 MiB VMEM -> keep TB <= 256 and try for a >=2-step
    'parallel' grid so both cores get work.  v5e/v6e: 1 TC, 128 MiB VMEM -> TB up
    to 512 for large batches to amortise per-grid-step overhead.
    """
    b8 = _round_up(B, 8)
    if "7" in kind:                                   # v7x family
        return max(8, min(256, _round_up(pl.cdiv(B, 2), 8), b8))
    cap = 512 if B >= 512 else 256
    return max(8, min(cap, b8))


def _derived_vmem_limit(TB, input_size, Kp, Op, weight_bufs):
    """Scoped-VMEM ask derived from the actual block footprint (bytes)."""
    streamed = TB * input_size * 2 + TB * Kp * 2 + TB * Op * 4        # x + eps (bf16), out (f32)
    weights = (input_size * 2 * Kp) * 2 + (2 * Kp) * 4 + (Kp * Op) * 2 + Op * 4
    interm = TB * (2 * Kp) * 4 * 4                                    # enc/sigma/z live f32 values
    limit = 2 * streamed + weight_bufs * weights + interm + (8 << 20)  # + compiler headroom
    return int(min(max(limit, 16 << 20), 64 << 20))


def _weight_spec(shape, single_buffer):
    idx = lambda i: (0, 0)
    if single_buffer and hasattr(pl, "Buffered"):
        try:
            # Grid-invariant operand: one resident VMEM copy is enough.
            return pl.BlockSpec(shape, idx, pipeline_mode=pl.Buffered(1))
        except TypeError:
            pass
    return pl.BlockSpec(shape, idx)


def _run_padded(x_bf16, prep, eps_mean_bf16, single_buffer_weights):
    B, input_size = x_bf16.shape
    Kp, Op = prep["Kp"], prep["Op"]
    TB = _pick_batch_tile(B, _device_kind())
    grid = (pl.cdiv(B, TB),)
    weight_bufs = 1 if single_buffer_weights else 2

    cost = pl.CostEstimate(
        flops=2 * B * input_size * (2 * Kp) + 2 * B * Kp * Op,
        transcendentals=2 * B * Kp,                                   # exp + log1p (sigma half)
        bytes_accessed=(B * input_size * 2 + B * Kp * 2 + B * Op * 4
                        + input_size * 2 * Kp * 2 + 2 * Kp * 4 + Kp * Op * 2 + Op * 4),
    )

    kernel = functools.partial(_vib_kernel, Kp=Kp)

    return pl.pallas_call(
        kernel,
        out_shape=jax.ShapeDtypeStruct((B, Op), jnp.float32),
        grid_spec=pltpu.PrefetchScalarGridSpec(
            num_scalar_prefetch=0,
            grid=grid,
            in_specs=[
                pl.BlockSpec((TB, input_size), lambda i: (i, 0)),            # x (bf16)
                _weight_spec((input_size, 2 * Kp), single_buffer_weights),   # fused enc W (bf16)
                _weight_spec((1, 2 * Kp), single_buffer_weights),            # fused enc bias (f32)
                _weight_spec((Kp, Op), single_buffer_weights),               # decoder W (bf16)
                _weight_spec((1, Op), single_buffer_weights),                # decoder bias (f32)
                pl.BlockSpec((TB, Kp), lambda i: (i, 0)),                    # mean(eps) (bf16)
            ],
            out_specs=pl.BlockSpec((TB, Op), lambda i: (i, 0)),
        ),
        compiler_params=pltpu.CompilerParams(
            dimension_semantics=("parallel",),
            vmem_limit_bytes=_derived_vmem_limit(TB, input_size, Kp, Op, weight_bufs),
        ),
        cost_estimate=cost,
    )(x_bf16, prep["wenc"], prep["benc"], prep["wd"], prep["bd"], eps_mean_bf16)


def _run(x, prep, eps_mean_padded_bf16):
    x_bf16 = x.astype(jnp.bfloat16)
    try:
        return _run_padded(x_bf16, prep, eps_mean_padded_bf16, single_buffer_weights=True)
    except Exception:
        # Fallback if pipeline_mode=pl.Buffered(1) is rejected by this jax/Mosaic build.
        return _run_padded(x_bf16, prep, eps_mean_padded_bf16, single_buffer_weights=False)


def vib_forward(x, prep, eps, trim=True):
    """x: [B, input_size] f32; eps: [num_latent, B, K] standard-normal draws."""
    K, Kp = prep["K"], prep["Kp"]
    # Algebraic collapse of the latent loop: only mean(eps) reaches the kernel.
    eps_mean = jnp.pad(jnp.mean(eps, axis=0), ((0, 0), (0, Kp - K))).astype(jnp.bfloat16)
    out = _run(x, prep, eps_mean)
    # The [:, :output_size] slice is a separate XLA copy; consumers that can read the
    # padded [B, Op] buffer (valid columns :output_size) should pass trim=False.
    return out[:, :prep["output_size"]] if trim else out


def vib_forward_sampled(x, prep, key, num_latent=12, trim=True):
    """Fast path: mean of L iid N(0,1) draws is N(0, 1/L) -- sample it directly.

    Distribution-equivalent to vib_forward (not bit-identical to an explicit eps
    tensor).  Padded lanes of the draw need not be zeroed because wd rows K..Kp are
    zero (prepare_vib_params invariant)."""
    B = x.shape[0]
    scale = 1.0 / math.sqrt(num_latent)
    eps_mean = (scale * jax.random.normal(key, (B, prep["Kp"]), jnp.float32)
                ).astype(jnp.bfloat16)
    out = _run(x, prep, eps_mean)
    return out[:, :prep["output_size"]] if trim else out


def _xavier_uniform(key, out_features, in_features):
    a = math.sqrt(6.0 / (in_features + out_features))
    return jax.random.uniform(key, (out_features, in_features),
                              dtype=jnp.float32, minval=-a, maxval=a)


def init_vib_params(key, input_size, K, output_size):
    k1, k2, k3 = jax.random.split(key, 3)
    return {
        "wm": _xavier_uniform(k1, K, input_size),
        "bm": jnp.zeros((K,), jnp.float32),
        "ws": _xavier_uniform(k2, K, input_size),
        "bs": jnp.zeros((K,), jnp.float32),
        "wd": _xavier_uniform(k3, output_size, K),
        "bd": jnp.zeros((output_size,), jnp.float32),
    }


def vib_reference(x, params, eps):
    """Pure-JAX f32 reference matching the PyTorch forward (explicit latent loop)."""
    mu = x @ params["wm"].T + params["bm"]
    pre = jnp.maximum(x @ params["ws"].T + params["bs"], 0.0) - 5.0
    sigma = jax.nn.softplus(pre)
    latents = mu[None] + sigma[None] * eps                            # [L, B, K]
    outs = jnp.einsum("lbk,ok->lbo", latents, params["wd"]) + params["bd"]
    return outs.mean(axis=0)


if __name__ == "__main__":
    # small shapes consistent with the module's forward
    B = 8
    input_size = 64
    K = 32
    num_latent = 12
    output_size = 2

    key = jax.random.PRNGKey(0)
    kx, keps, kp, ks = jax.random.split(key, 4)

    x = jax.random.normal(kx, (B, input_size), dtype=jnp.float32)
    # TODO(synk): eps stands in for Normal(mu, sigma).rsample()'s standard-normal draws;
    # PyTorch's RNG stream itself has no Pallas equivalent.
    eps = jax.random.normal(keps, (num_latent, B, K), dtype=jnp.float32)
    params = init_vib_params(kp, input_size, K, output_size)

    prep = prepare_vib_params(params)   # one-time fuse/transpose/pad/bf16-cast

    out = jax.block_until_ready(vib_forward(x, prep, eps))
    ref = vib_reference(x, params, eps)

    assert out.shape == (B, output_size)
    max_err = float(jnp.max(jnp.abs(out - ref)))
    # bf16 MXU operands with f32 accumulation -> bf16-appropriate tolerance vs f32 ref.
    assert jnp.allclose(out, ref, atol=6e-2, rtol=6e-2), max_err

    # Fast path (direct mean(eps) ~ N(0, 1/L) draw) must also run clean.
    out_fast = jax.block_until_ready(vib_forward_sampled(x, prep, ks, num_latent))
    assert out_fast.shape == (B, output_size)
    assert bool(jnp.all(jnp.isfinite(out_fast)))

    print("KERNEL_OK")
</pallas_src>

<mosaic_0001>
module attributes {stable_mosaic.version = 11 : i64} {
  func.func @_vib_kernel(%arg0: i32, %arg1: memref<8x64xbf16, #tpu.memory_space<vmem>>, %arg2: memref<64x256xbf16, #tpu.memory_space<vmem>>, %arg3: memref<1x256xf32, #tpu.memory_space<vmem>>, %arg4: memref<128x128xbf16, #tpu.memory_space<vmem>>, %arg5: memref<1x128xf32, #tpu.memory_space<vmem>>, %arg6: memref<8x128xbf16, #tpu.memory_space<vmem>>, %arg7: memref<8x128xf32, #tpu.memory_space<vmem>>) attributes {dimension_semantics = [#tpu.dimension_semantics<parallel>], iteration_bounds = array<i64: 1>, scalar_prefetch = 0 : i64, scratch_operands = 0 : i64, tpu.core_type = #tpu.core_type<tc>, window_params = [{transform_indices = @transform_0, window_bounds = array<i64: 8, 64>}, {pipeline_mode = #tpu.pipeline_mode<synchronous>, transform_indices = @transform_1, window_bounds = array<i64: 64, 256>}, {pipeline_mode = #tpu.pipeline_mode<synchronous>, transform_indices = @transform_2, window_bounds = array<i64: 1, 256>}, {pipeline_mode = #tpu.pipeline_mode<synchronous>, transform_indices = @transform_3, window_bounds = array<i64: 128, 128>}, {pipeline_mode = #tpu.pipeline_mode<synchronous>, transform_indices = @transform_4, window_bounds = array<i64: 1, 128>}, {transform_indices = @transform_5, window_bounds = array<i64: 8, 128>}, {transform_indices = @transform_6, window_bounds = array<i64: 8, 128>}]} {
    %c0 = arith.constant 0 : index
    %c0_0 = arith.constant 0 : index
    %0 = vector.load %arg1[%c0, %c0_0] : memref<8x64xbf16, #tpu.memory_space<vmem>>, vector<8x64xbf16>
    %c0_1 = arith.constant 0 : index
    %c0_2 = arith.constant 0 : index
    %1 = vector.load %arg2[%c0_1, %c0_2] : memref<64x256xbf16, #tpu.memory_space<vmem>>, vector<64x256xbf16>
    %cst = arith.constant dense<0.000000e+00> : vector<8x256xf32>
    %2 = tpu.matmul %0, %1, %cst {dimension_numbers = #tpu.dot_dimension_numbers<[1], [0], [0], [1], [0, 0, 1, 1], [], []>} : vector<8x64xbf16>, vector<64x256xbf16>, vector<8x256xf32> -> vector<8x256xf32>
    %c0_3 = arith.constant 0 : index
    %c0_4 = arith.constant 0 : index
    %3 = vector.load %arg3[%c0_3, %c0_4] : memref<1x256xf32, #tpu.memory_space<vmem>>, vector<1x256xf32>
    %4 = vector.broadcast %3 : vector<1x256xf32> to vector<8x256xf32>
    %5 = arith.addf %2, %4 : vector<8x256xf32>
    %6 = vector.extract_strided_slice %5 {offsets = [0, 0], sizes = [8, 128], strides = [1, 1]} : vector<8x256xf32> to vector<8x128xf32>
    %7 = vector.extract_strided_slice %5 {offsets = [0, 128], sizes = [8, 128], strides = [1, 1]} : vector<8x256xf32> to vector<8x128xf32>
    %cst_5 = arith.constant 0.000000e+00 : f32
    %8 = vector.broadcast %cst_5 : f32 to vector<8x128xf32>
    %9 = arith.maximumf %7, %8 : vector<8x128xf32>
    %cst_6 = arith.constant 5.000000e+00 : f32
    %10 = vector.broadcast %cst_6 : f32 to vector<8x128xf32>
    %11 = arith.subf %9, %10 : vector<8x128xf32>
    %cst_7 = arith.constant 5.000000e+00 : f32
    %12 = vector.broadcast %cst_7 : f32 to vector<8x128xf32>
    %13 = arith.subf %7, %12 : vector<8x128xf32>
    %cst_8 = arith.constant 0.000000e+00 : f32
    %14 = vector.broadcast %cst_8 : f32 to vector<8x128xf32>
    %15 = arith.maximumf %13, %14 : vector<8x128xf32>
    %16 = math.absf %11 : vector<8x128xf32>
    %cst_9 = arith.constant 0.000000e+00 : f32
    %17 = vector.broadcast %cst_9 : f32 to vector<8x128xf32>
    %18 = arith.subf %17, %16 : vector<8x128xf32>
    %19 = math.exp %18 : vector<8x128xf32>
    %20 = math.log1p %19 : vector<8x128xf32>
    %21 = arith.addf %15, %20 : vector<8x128xf32>
    %c0_10 = arith.constant 0 : index
    %c0_11 = arith.constant 0 : index
    %22 = vector.load %arg6[%c0_10, %c0_11] : memref<8x128xbf16, #tpu.memory_space<vmem>>, vector<8x128xbf16>
    %23 = arith.extf %22 : vector<8x128xbf16> to vector<8x128xf32>
    %24 = arith.mulf %21, %23 : vector<8x128xf32>
    %25 = arith.addf %6, %24 : vector<8x128xf32>
    %26 = arith.truncf %25 : vector<8x128xf32> to vector<8x128xbf16>
    %c0_12 = arith.constant 0 : index
    %c0_13 = arith.constant 0 : index
    %27 = vector.load %arg4[%c0_12, %c0_13] : memref<128x128xbf16, #tpu.memory_space<vmem>>, vector<128x128xbf16>
    %cst_14 = arith.constant dense<0.000000e+00> : vector<8x128xf32>
    %28 = tpu.matmul %26, %27, %cst_14 {dimension_numbers = #tpu.dot_dimension_numbers<[1], [0], [0], [1], [0, 0, 1, 1], [], []>} : vector<8x128xbf16>, vector<128x128xbf16>, vector<8x128xf32> -> vector<8x128xf32>
    %c0_15 = arith.constant 0 : index
    %c0_16 = arith.constant 0 : index
    %29 = vector.load %arg5[%c0_15, %c0_16] : memref<1x128xf32, #tpu.memory_space<vmem>>, vector<1x128xf32>
    %30 = vector.broadcast %29 : vector<1x128xf32> to vector<8x128xf32>
    %31 = arith.addf %28, %30 : vector<8x128xf32>
    %c0_17 = arith.constant 0 : index
    %c0_18 = arith.constant 0 : index
    %32 = vector.load %arg7[%c0_17, %c0_18] : memref<8x128xf32, #tpu.memory_space<vmem>>, vector<8x128xf32>
    tpu.vector_store %arg7[%c0_17, %c0_18], %31 {strides = array<i32>} : memref<8x128xf32, #tpu.memory_space<vmem>>, vector<8x128xf32>,
    return
  }
  func.func @transform_0(%arg0: i32) -> (i32, i32) {
    %c0_i32 = arith.constant 0 : i32
    %c0_i32_0 = arith.constant 0 : i32
    return %arg0, %c0_i32 : i32, i32
  }
  func.func @transform_1(%arg0: i32) -> (i32, i32) {
    %c0_i32 = arith.constant 0 : i32
    %c0_i32_0 = arith.constant 0 : i32
    %c0_i32_1 = arith.constant 0 : i32
    return %c0_i32, %c0_i32_0 : i32, i32
  }
  func.func @transform_2(%arg0: i32) -> (i32, i32) {
    %c0_i32 = arith.constant 0 : i32
    %c0_i32_0 = arith.constant 0 : i32
    %c0_i32_1 = arith.constant 0 : i32
    return %c0_i32, %c0_i32_0 : i32, i32
  }
  func.func @transform_3(%arg0: i32) -> (i32, i32) {
    %c0_i32 = arith.constant 0 : i32
    %c0_i32_0 = arith.constant 0 : i32
    %c0_i32_1 = arith.constant 0 : i32
    return %c0_i32, %c0_i32_0 : i32, i32
  }
  func.func @transform_4(%arg0: i32) -> (i32, i32) {
    %c0_i32 = arith.constant 0 : i32
    %c0_i32_0 = arith.constant 0 : i32
    %c0_i32_1 = arith.constant 0 : i32
    return %c0_i32, %c0_i32_0 : i32, i32
  }
  func.func @transform_5(%arg0: i32) -> (i32, i32) {
    %c0_i32 = arith.constant 0 : i32
    %c0_i32_0 = arith.constant 0 : i32
    return %arg0, %c0_i32 : i32, i32
  }
  func.func @transform_6(%arg0: i32) -> (i32, i32) {
    %c0_i32 = arith.constant 0 : i32
    %c0_i32_0 = arith.constant 0 : i32
    return %arg0, %c0_i32 : i32, i32
  }
}

module attributes {stable_mosaic.version = 11 : i64} {
  func.func @_vib_kernel(%arg0: i32, %arg1: memref<8x64xbf16, #tpu.memory_space<vmem>>, %arg2: memref<64x256xbf16, #tpu.memory_space<vmem>>, %arg3: memref<1x256xf32, #tpu.memory_space<vmem>>, %arg4: memref<128x128xbf16, #tpu.memory_space<vmem>>, %arg5: memref<1x128xf32, #tpu.memory_space<vmem>>, %arg6: memref<8x128xbf16, #tpu.memory_space<vmem>>, %arg7: memref<8x128xf32, #tpu.memory_space<vmem>>) attributes {dimension_semantics = [#tpu.dimension_semantics<parallel>], iteration_bounds = array<i64: 1>, scalar_prefetch = 0 : i64, scratch_operands = 0 : i64, tpu.core_type = #tpu.core_type<tc>, window_params = [{transform_indices = @transform_0, window_bounds = array<i64: 8, 64>}, {pipeline_mode = #tpu.pipeline_mode<synchronous>, transform_indices = @transform_1, window_bounds = array<i64: 64, 256>}, {pipeline_mode = #tpu.pipeline_mode<synchronous>, transform_indices = @transform_2, window_bounds = array<i64: 1, 256>}, {pipeline_mode = #tpu.pipeline_mode<synchronous>, transform_indices = @transform_3, window_bounds = array<i64: 128, 128>}, {pipeline_mode = #tpu.pipeline_mode<synchronous>, transform_indices = @transform_4, window_bounds = array<i64: 1, 128>}, {transform_indices = @transform_5, window_bounds = array<i64: 8, 128>}, {transform_indices = @transform_6, window_bounds = array<i64: 8, 128>}]} {
    %c0 = arith.constant 0 : index
    %c0_0 = arith.constant 0 : index
    %0 = vector.load %arg1[%c0, %c0_0] : memref<8x64xbf16, #tpu.memory_space<vmem>>, vector<8x64xbf16>
    %c0_1 = arith.constant 0 : index
    %c0_2 = arith.constant 0 : index
    %1 = vector.load %arg2[%c0_1, %c0_2] : memref<64x256xbf16, #tpu.memory_space<vmem>>, vector<64x256xbf16>
    %cst = arith.constant dense<0.000000e+00> : vector<8x256xf32>
    %2 = tpu.matmul %0, %1, %cst {dimension_numbers = #tpu.dot_dimension_numbers<[1], [0], [0], [1], [0, 0, 1, 1], [], []>} : vector<8x64xbf16>, vector<64x256xbf16>, vector<8x256xf32> -> vector<8x256xf32>
    %c0_3 = arith.constant 0 : index
    %c0_4 = arith.constant 0 : index
    %3 = vector.load %arg3[%c0_3, %c0_4] : memref<1x256xf32, #tpu.memory_space<vmem>>, vector<1x256xf32>
    %4 = vector.broadcast %3 : vector<1x256xf32> to vector<8x256xf32>
    %5 = arith.addf %2, %4 : vector<8x256xf32>
    %6 = vector.extract_strided_slice %5 {offsets = [0, 0], sizes = [8, 128], strides = [1, 1]} : vector<8x256xf32> to vector<8x128xf32>
    %7 = vector.extract_strided_slice %5 {offsets = [0, 128], sizes = [8, 128], strides = [1, 1]} : vector<8x256xf32> to vector<8x128xf32>
    %cst_5 = arith.constant 0.000000e+00 : f32
    %8 = vector.broadcast %cst_5 : f32 to vector<8x128xf32>
    %9 = arith.maximumf %7, %8 : vector<8x128xf32>
    %cst_6 = arith.constant 5.000000e+00 : f32
    %10 = vector.broadcast %cst_6 : f32 to vector<8x128xf32>
    %11 = arith.subf %9, %10 : vector<8x128xf32>
    %cst_7 = arith.constant 5.000000e+00 : f32
    %12 = vector.broadcast %cst_7 : f32 to vector<8x128xf32>
    %13 = arith.subf %7, %12 : vector<8x128xf32>
    %cst_8 = arith.constant 0.000000e+00 : f32
    %14 = vector.broadcast %cst_8 : f32 to vector<8x128xf32>
    %15 = arith.maximumf %13, %14 : vector<8x128xf32>
    %16 = math.absf %11 : vector<8x128xf32>
    %cst_9 = arith.constant 0.000000e+00 : f32
    %17 = vector.broadcast %cst_9 : f32 to vector<8x128xf32>
    %18 = arith.subf %17, %16 : vector<8x128xf32>
    %19 = math.exp %18 : vector<8x128xf32>
    %20 = math.log1p %19 : vector<8x128xf32>
    %21 = arith.addf %15, %20 : vector<8x128xf32>
    %c0_10 = arith.constant 0 : index
    %c0_11 = arith.constant 0 : index
    %22 = vector.load %arg6[%c0_10, %c0_11] : memref<8x128xbf16, #tpu.memory_space<vmem>>, vector<8x128xbf16>
    %23 = arith.extf %22 : vector<8x128xbf16> to vector<8x128xf32>
    %24 = arith.mulf %21, %23 : vector<8x128xf32>
    %25 = arith.addf %6, %24 : vector<8x128xf32>
    %26 = arith.truncf %25 : vector<8x128xf32> to vector<8x128xbf16>
    %c0_12 = arith.constant 0 : index
    %c0_13 = arith.constant 0 : index
    %27 = vector.load %arg4[%c0_12, %c0_13] : memref<128x128xbf16, #tpu.memory_space<vmem>>, vector<128x128xbf16>
    %cst_14 = arith.constant dense<0.000000e+00> : vector<8x128xf32>
    %28 = tpu.matmul %26, %27, %cst_14 {dimension_numbers = #tpu.dot_dimension_numbers<[1], [0], [0], [1], [0, 0, 1, 1], [], []>} : vector<8x128xbf16>, vector<128x128xbf16>, vector<8x128xf32> -> vector<8x128xf32>
    %c0_15 = arith.constant 0 : index
    %c0_16 = arith.constant 0 : index
    %29 = vector.load %arg5[%c0_15, %c0_16] : memref<1x128xf32, #tpu.memory_space<vmem>>, vector<1x128xf32>
    %30 = vector.broadcast %29 : vector<1x128xf32> to vector<8x128xf32>
    %31 = arith.addf %28, %30 : vector<8x128xf32>
    %c0_17 = arith.constant 0 : index
    %c0_18 = arith.constant 0 : index
    %32 = vector.load %arg7[%c0_17, %c0_18] : memref<8x128xf32, #tpu.memory_space<vmem>>, vector<8x128xf32>
    tpu.vector_store %arg7[%c0_17, %c0_18], %31 {strides = array<i32>} : memref<8x128xf32, #tpu.memory_space<vmem>>, vector<8x128xf32>,
    return
  }
  func.func @transform_0(%arg0: i32) -> (i32, i32) {
    %c0_i32 = arith.constant 0 : i32
    %c0_i32_0 = arith.constant 0 : i32
    return %arg0, %c0_i32 : i32, i32
  }
  func.func @transform_1(%arg0: i32) -> (i32, i32) {
    %c0_i32 = arith.constant 0 : i32
    %c0_i32_0 = arith.constant 0 : i32
    %c0_i32_1 = arith.constant 0 : i32
    return %c0_i32, %c0_i32_0 : i32, i32
  }
  func.func @transform_2(%arg0: i32) -> (i32, i32) {
    %c0_i32 = arith.constant 0 : i32
    %c0_i32_0 = arith.constant 0 : i32
    %c0_i32_1 = arith.constant 0 : i32
    return %c0_i32, %c0_i32_0 : i32, i32
  }
  func.func @transform_3(%arg0: i32) -> (i32, i32) {
    %c0_i32 = arith.constant 0 : i32
    %c0_i32_0 = arith.constant 0 : i32
    %c0_i32_1 = arith.constant 0 : i32
    return %c0_i32, %c0_i32_0 : i32, i32
  }
  func.func @transform_4(%arg0: i32) -> (i32, i32) {
    %c0_i32 = arith.constant 0 : i32
    %c0_i32_0 = arith.constant 0 : i32
    %c0_i32_1 = arith.constant 0 : i32
    return %c0_i32, %c0_i32_0 : i32, i32
  }
  func.func @transform_5(%arg0: i32) -> (i32, i32) {
    %c0_i32 = arith.constant 0 : i32
    %c0_i32_0 = arith.constant 0 : i32
    return %arg0, %c0_i32 : i32, i32
  }
  func.func @transform_6(%arg0: i32) -> (i32, i32) {
    %c0_i32 = arith.constant 0 : i32
    %c0_i32_0 = arith.constant 0 : i32
    return %arg0, %c0_i32 : i32, i32
  }
}

</mosaic_0001>

<bundles_post_ra>
// kernel: tpu_custom_call.1
= control target key start
LH: loop header
LB: loop body
LE: loop exit
PB: predicated region body
PF: predicated region fallthrough
CT: control target
= control target key end

     0   :  { %11 = vsyncpa [#allocation3], 0  ;;  %s602_s0 = inlined_call_operand.hbm [shape: bf16[8,64], index: 0, kind: input, shape index: {}]   ;;  %s603_s1 = inlined_call_operand.hbm [shape: bf16[64,256], index: 1, kind: input, shape index: {}]   ;;  %s604_s2 = inlined_call_operand.vmem [shape: f32[1,256], index: 2, kind: input, shape index: {}]   ;;  %s605_s3 = inlined_call_operand.hbm [shape: bf16[128,128], index: 3, kind: input, shape index: {}]   ;;  %s606_s4 = inlined_call_operand.vmem [shape: f32[1,128], index: 4, kind: input, shape index: {}]   ;;  %s607_s5 = inlined_call_operand.vmem [shape: bf16[8,128], index: 5, kind: input, shape index: {}]   ;;  %s608_s6 = inlined_call_operand.hbm [shape: f32[8,128], index: 6, kind: output, shape index: {}]  }
   0x1   :  { %12 = vsyncpa [#allocation6], 0 }
   0x2   :  { %13 = vsyncpa [#allocation4], 0  ;;  %s499_s21 = smov [#allocation5]   ;;  %s405_s25 = scalar_lea.hbm %s603_s1, 1024 }
   0x3   :  { %s29_s22 = sshll.u32 %s499_s21, 4  ;;  %p406_p0 = scmp.ne.s32.totalorder %s603_s1, %s405_s25  ;;  %s30_s22 = int_to_ptr.vmem [resolvable:$true] %s29_s22 }
   0x4   :  { %p409_p1 = scmp.lt.u32.totalorder %s405_s25, %s603_s1 }
   0x6   :  { %p411_p2 = pnand %p409_p1, %p406_p0 }
   0x8   :  { %414 = shalt.err (!%p411_p2)
}
   0x9   :  { %s415_s30 = scalar_lea.vmem %s30_s22, 1024  ;;  %p420_p4 = scmp.lt.s32.totalorder %s30_s22, %s30_s22 }
   0xa   :  { %p416_p3 = scmp.ne.s32.totalorder %s30_s22, %s415_s30  ;;  %p421_p5 = scmp.lt.s32.totalorder %s415_s30, %s415_s30 }
   0xc   :  { %p422_p6 = por %p421_p5, %p420_p4 }
   0xe   :  { %p423_p7 = pnand %p422_p6, %p416_p3 }
  0x10   :  { %426 = shalt.err (!%p423_p7)
}
  0x11   :  { %s500_s7 = smov 128   ;;  %s501_s8 = smov 8  }
  0x12   :  { %35 = dma.hbm_to_vmem [thread:$0]  %s603_s1, 1024, %s30_s22, [#allocation6], %s500_s7, %s500_s7, %s501_s8  }
  0x13   :  { %s502_s11 = smov [#allocation2]   ;;  %s503_s13 = smov [#allocation7]  }
  0x14   :  { %s20_s12 = sshll.u32 %s502_s11, 4  ;;  %s43_s14 = sshll.u32 %s503_s13, 4  ;;  %s21_s12 = int_to_ptr.vmem [resolvable:$true] %s20_s12  ;;  %s44_s14 = int_to_ptr.vmem [resolvable:$true] %s43_s14 }
  0x15   :  { %s427_s17 = scalar_lea.hbm %s602_s0, 64 }
  0x16   :  { %p428_p8 = scmp.ne.s32.totalorder %s602_s0, %s427_s17  ;;  %p431_p9 = scmp.lt.u32.totalorder %s427_s17, %s602_s0 }
  0x18   :  { %p433_p10 = pnand %p431_p9, %p428_p8 }
  0x1a   :  { %436 = shalt.err (!%p433_p10)
}
  0x1b   :  { %s437_s1 = scalar_lea.vmem %s21_s12, 64  ;;  %p442_p12 = scmp.lt.s32.totalorder %s21_s12, %s21_s12 }
  0x1c   :  { %p438_p11 = scmp.ne.s32.totalorder %s21_s12, %s437_s1  ;;  %p443_p13 = scmp.lt.s32.totalorder %s437_s1, %s437_s1 }
  0x1e   :  { %p444_p0 = por %p443_p13, %p442_p12 }
  0x20   :  { %p445_p1 = pnand %p444_p0, %p438_p11 }
  0x22   :  { %448 = shalt.err (!%p445_p1)
}
  0x23   :  { %23 = dma.hbm_to_vmem [thread:$0]  %s602_s0, 64, %s21_s12, [#allocation3]  }
  0x24   :  { %s449_s26 = scalar_lea.hbm %s605_s3, 1024 }
  0x25   :  { %p450_p2 = scmp.ne.s32.totalorder %s605_s3, %s449_s26  ;;  %p453_p3 = scmp.lt.u32.totalorder %s449_s26, %s605_s3 }
  0x27   :  { %p455_p4 = pnand %p453_p3, %p450_p2 }
  0x29   :  { %458 = shalt.err (!%p455_p4)
}
  0x2a   :  { %s459_s7 = scalar_lea.vmem %s44_s14, 1024  ;;  %p464_p6 = scmp.lt.s32.totalorder %s44_s14, %s44_s14 }
  0x2b   :  { %p460_p5 = scmp.ne.s32.totalorder %s44_s14, %s459_s7  ;;  %p465_p7 = scmp.lt.s32.totalorder %s459_s7, %s459_s7 }
  0x2d   :  { %p466_p8 = por %p465_p7, %p464_p6 }
  0x2f   :  { %p467_p9 = pnand %p466_p8, %p460_p5 }
  0x31   :  { %470 = shalt.err (!%p467_p9)
}
  0x32   :  { %s504_s0 = smov 64   ;;  %s505_s8 = smov 4  }
  0x33   :  { %49 = dma.hbm_to_vmem [thread:$0]  %s605_s3, 1024, %s44_s14, [#allocation6], %s504_s0, %s504_s0, %s505_s8  }
  0x34   :  { %493 = dma.done.wait [#allocation3], 64  }
  0x35   :  { %494 = vsyncadd [#allocation3], 4294967232 }
  0x36   :  { %495 = dma.done.wait [#allocation6], 2048  }
  0x37   :  { %496 = vsyncadd [#allocation6], 4294965248  ;;  %v506_v0 = vmov 0   ;;  %v381_v1 = vld [vmem:[#allocation5 + $0x4] ss:$8 sps:$4 sm:$0xff]   ;;  %vm125_vm0 = vcmask 523264   ;;  %v75_v19 = vlaneseq }
  0x38   :  { %161 = vmatprep.mubr.bf16.mxu0 %v506_v0  ;;  %v383_v2 = vld [vmem:[#allocation5] ss:$8 sps:$4 sm:$0xff]   ;;  %129 = vmatprep.subr.bf16.mxu0 %v381_v1  ;;  %v384_v3 = vld [vmem:[#allocation5 + $0x14] ss:$8 sps:$4 sm:$0xff]   ;;  %v386_v4 = vld [vmem:[#allocation5 + $0x10] ss:$8 sps:$4 sm:$0xff]  }
  0x39   :  { %130 = vmatpush1.bf16.msra.mxu0 %v383_v2  ;;  %v387_v5 = vld [vmem:[#allocation5 + $0x24] ss:$8 sps:$4 sm:$0xff]   ;;  %v389_v6 = vld [vmem:[#allocation5 + $0x20] ss:$8 sps:$4 sm:$0xff]   ;;  %v390_v7 = vld [vmem:[#allocation5 + $0x34] ss:$8 sps:$4 sm:$0xff]  }
  0x3a   :  { %131 = vmatprep.subr.bf16.mxu0 %v384_v3  ;;  %v392_v8 = vld [vmem:[#allocation5 + $0x30] ss:$8 sps:$4 sm:$0xff]   ;;  %v64_v9 = vld [vmem:[#allocation2] sm:$0xf]  ;;  %v393_v10 = vld [vmem:[#allocation7] sm:$0xff]   ;;  %v507_v11 = vmov 0.0  }
  0x3b   :  { %350 = vmatprep.subr.bf16.mxu1 %v507_v11  ;;  %v394_v12 = vld [vmem:[#allocation7 + $0x8] sm:$0xff]   ;;  %v395_v13 = vld [vmem:[#allocation7 + $0x10] sm:$0xff]   ;;  %v396_v14 = vld [vmem:[#allocation7 + $0x18] sm:$0xff]   ;;  %vm508_vm1 = vmmov 0   ;;  %v76_v20 = vshrl.u32 %v75_v19, 7  ;;  %s509_s15 = smov [#allocation8]  }
  0x3c   :  { %351 = vmatpush3.bf16.msra.mxu1 %v393_v10  ;;  %v397_v15 = vld [vmem:[#allocation7 + $0x20] sm:$0xff]   ;;  %v398_v16 = vld [vmem:[#allocation7 + $0x28] sm:$0xff]   ;;  %v399_v17 = vld [vmem:[#allocation7 + $0x30] sm:$0xff]   ;;  %366 = vmatprep.mubr.msk.bf16.mxu1 %vm508_vm1, %v507_v11 }
  0x3d   :  { %132 = vmatpush1.bf16.msra.mxu0 %v386_v4  ;;  %352 = vmatprep.subr.bf16.mxu1 %v507_v11  ;;  %v400_v18 = vld [vmem:[#allocation7 + $0x38] sm:$0xff]   ;;  %v81_v21 = vsub.s32 1, %v76_v20  ;;  %v77_v38 = vsub.s32 0, %v76_v20 }
  0x3e   :  { %133 = vmatprep.subr.bf16.mxu0 %v387_v5  ;;  %v73_v22 = vld [vmem:[%s604_s2] sm:$0x3] }
  0x3f   :  { %v82_v23 = vrot.slane %v73_v22, %v81_v21  ;;  %v188_v41 = vld [vmem:[%s607_s5] sm:$0xf]  ;;  %v78_v45 = vrot.slane %v73_v22, %v77_v38  ;;  %s311_s5 = sshll.u32 %s509_s15, 4  ;;  %s312_s5 = int_to_ptr.vmem [resolvable:$true] %s311_s5 }
  0x40   :  { %353 = vmatpush3.bf16.msra.mxu1 %v394_v12  ;;  %v189_v47 = vunpack.c.l.bf16 %v188_v41  ;;  %v332_v54 = vld [vmem:[%s606_s4] ss:$0 sm:$0xff]  ;;  %s471_s16 = scalar_lea.vmem %s312_s5, 128  ;;  %p476_p11 = scmp.lt.s32.totalorder %s312_s5, %s312_s5 }
  0x41   :  { %134 = vmatpush1.bf16.msra.mxu0 %v389_v6  ;;  %354 = vmatprep.subr.bf16.mxu1 %v507_v11  ;;  %p472_p10 = scmp.ne.s32.totalorder %s312_s5, %s471_s16  ;;  %p477_p12 = scmp.lt.s32.totalorder %s471_s16, %s471_s16 }
  0x42   :  { %135 = vmatprep.subr.bf16.mxu0 %v390_v7 }
  0x43   :  { %p478_p13 = por %p477_p12, %p476_p11 }
  0x44   :  { %355 = vmatpush3.bf16.msra.mxu1 %v395_v13 }
  0x45   :  { %136 = vmatpush1.bf16.msra.mxu0 %v392_v8  ;;  %356 = vmatprep.subr.bf16.mxu1 %v507_v11  ;;  %p479_p0 = pnand %p478_p13, %p472_p10 }
  0x48   :  { %329 = vmatmul.mubr.msk.bf16.vlgmr.msra.gmra.mrb[0].mxu0 %vm125_vm0, %v64_v9  ;;  %357 = vmatpush3.bf16.msra.mxu1 %v396_v14 }
  0x49   :  { %358 = vmatprep.subr.bf16.mxu1 %v507_v11 }
  0x4c   :  { %359 = vmatpush3.bf16.msra.mxu1 %v397_v15 }
  0x4d   :  { %360 = vmatprep.subr.bf16.mxu1 %v507_v11 }
  0x50   :  { %361 = vmatpush3.bf16.msra.mxu1 %v398_v16 }
  0x51   :  { %362 = vmatprep.subr.bf16.mxu1 %v507_v11 }
  0x54   :  { %363 = vmatpush3.bf16.msra.mxu1 %v399_v17 }
  0x55   :  { %364 = vmatprep.subr.bf16.mxu1 %v507_v11 }
  0x58   :  { %365 = vmatpush3.bf16.msra.mxu1 %v400_v18 }
 0x11b   :  { %v163_v24 = vpop.f32.mrb[0].mxu0 }
 0x11c   :  { %v165_v25 = vpop.f32.mrb[1].mxu0  ;;  %v164_v50 = vadd.f32 %v163_v24, %v78_v45 }
 0x11d   :  { %v166_v26 = vadd.f32 %v165_v25, %v82_v23  ;;  %v167_v27 = vpop.f32.mrb[2].mxu0 }
 0x11e   :  { %v168_v28 = vpop.f32.mrb[3].mxu0 }
 0x11f   :  { %v170_v29 = vmax.f32 %v166_v26, 0.0  ;;  %v331_v39 = vadd.f32 -5.0, %v166_v26 }
 0x121   :  { %v330_v30 = vadd.f32 -5.0, %v170_v29  ;;  %v173_v46 = vmax.f32 %v331_v39, 0.0 }
 0x123   :  { %v174_v31 = vand.u32 2147483647, %v330_v30 }
 0x125   :  { %v175_v32 = vsub.f32 0.0, %v174_v31 }
 0x127   :  { %v176_v33 = vmul.f32 1.442695, %v175_v32 }
 0x129   :  { %401 = vpow2.f32 %v176_v33 }
 0x133   :  { %v402_v34 = vpop.eup %401 }
 0x134   :  { %v178_v35 = vadd.f32 1.0, %v402_v34  ;;  %v181_v36 = vmul.f32 -0.5, %v402_v34  ;;  %v184_v40 = vand.u32 2147483647, %v402_v34 }
 0x136   :  { %403 = vlog2.f32 %v178_v35  ;;  %v182_v37 = vadd.f32 1.0, %v181_v36  ;;  %vm185_vm2 = vcmp.lt.f32.partialorder %v184_v40, 0.0004427343 }
 0x138   :  { %v183_v44 = vmul.f32 %v402_v34, %v182_v37 }
 0x140   :  { %v404_v42 = vpop.eup %403 }
 0x141   :  { %v180_v43 = vmul.f32 0.6931472, %v404_v42 }
 0x143   :  { %v186_v48 = vsel %vm185_vm2, %v183_v44, %v180_v43 }
 0x144   :  { %v187_v49 = vadd.f32 %v186_v48, %v173_v46 }
 0x146   :  { %v190_v51 = vmul.f32 %v189_v47, %v187_v49 }
 0x148   :  { %v191_v52 = vadd.f32 %v190_v51, %v164_v50 }
 0x14a   :  { %v192_v53 = vpack.c.bf16 %v191_v52, %v191_v52 }
 0x14c   :  { %367 = vmatmul.mubr.bf16.vlgmr.msra.gmra.mrb[0].mxu1 %v192_v53 }
 0x21f   :  { %v298_v55 = vpop.f32.mrb[0].mxu1 }
 0x220   :  { %v299_v56 = vadd.f32 %v332_v54, %v298_v55  ;;  %v368_v57 = vpop.f32.mrb[1].mxu1 }
 0x221   :  { %v301_v58 = vpop.f32.mrb[2].mxu1 }
 0x222   :  { %304 = vst [vmem:[#allocation8] sm:$0xff] %v299_v56  ;;  %v369_v59 = vpop.f32.mrb[3].mxu1 }
 0x223   :  { %482 = shalt.err (!%p479_p0)
}
 0x224   :  { %s483_s4 = scalar_lea.hbm %s608_s6, 128 }
 0x225   :  { %p484_p1 = scmp.ne.s32.totalorder %s608_s6, %s483_s4  ;;  %p487_p2 = scmp.lt.u32.totalorder %s483_s4, %s608_s6 }
 0x227   :  { %p489_p3 = pnand %p487_p2, %p484_p1 }
 0x229   :  { %492 = shalt.err (!%p489_p3)
}
 0x22a   :  { %314 = dma.vmem_to_hbm [thread:$0]  %s312_s5, 128, %s608_s6, [#allocation4]  }
 0x22b   :  { %497 = dma.done.wait [#allocation4], 128  }
 0x22c   :  { %498 = vsyncadd [#allocation4], 4294967168 }
 0x22d   :  { %318 = vsyncpa [#allocation3], 1 }
 0x22e   :  { %319 = vsyncpa [#allocation6], 1 }
 0x22f   :  { %320 = vsyncpa [#allocation4], 1 }

// kernel: tpu_custom_call.1
= control target key start
LH: loop header
LB: loop body
LE: loop exit
PB: predicated region body
PF: predicated region fallthrough
CT: control target
= control target key end

     0   :  { %11 = vsyncpa [#allocation3], 0  ;;  %s602_s0 = inlined_call_operand.hbm [shape: bf16[8,64], index: 0, kind: input, shape index: {}]   ;;  %s603_s1 = inlined_call_operand.hbm [shape: bf16[64,256], index: 1, kind: input, shape index: {}]   ;;  %s604_s2 = inlined_call_operand.vmem [shape: f32[1,256], index: 2, kind: input, shape index: {}]   ;;  %s605_s3 = inlined_call_operand.hbm [shape: bf16[128,128], index: 3, kind: input, shape index: {}]   ;;  %s606_s4 = inlined_call_operand.vmem [shape: f32[1,128], index: 4, kind: input, shape index: {}]   ;;  %s607_s5 = inlined_call_operand.vmem [shape: bf16[8,128], index: 5, kind: input, shape index: {}]   ;;  %s608_s6 = inlined_call_operand.hbm [shape: f32[8,128], index: 6, kind: output, shape index: {}]  }
   0x1   :  { %12 = vsyncpa [#allocation6], 0 }
   0x2   :  { %13 = vsyncpa [#allocation4], 0  ;;  %s499_s21 = smov [#allocation5]   ;;  %s405_s25 = scalar_lea.hbm %s603_s1, 1024 }
   0x3   :  { %s29_s22 = sshll.u32 %s499_s21, 4  ;;  %p406_p0 = scmp.ne.s32.totalorder %s603_s1, %s405_s25  ;;  %s30_s22 = int_to_ptr.vmem [resolvable:$true] %s29_s22 }
   0x4   :  { %p409_p1 = scmp.lt.u32.totalorder %s405_s25, %s603_s1 }
   0x6   :  { %p411_p2 = pnand %p409_p1, %p406_p0 }
   0x8   :  { %414 = shalt.err (!%p411_p2)
}
   0x9   :  { %s415_s30 = scalar_lea.vmem %s30_s22, 1024  ;;  %p420_p4 = scmp.lt.s32.totalorder %s30_s22, %s30_s22 }
   0xa   :  { %p416_p3 = scmp.ne.s32.totalorder %s30_s22, %s415_s30  ;;  %p421_p5 = scmp.lt.s32.totalorder %s415_s30, %s415_s30 }
   0xc   :  { %p422_p6 = por %p421_p5, %p420_p4 }
   0xe   :  { %p423_p7 = pnand %p422_p6, %p416_p3 }
  0x10   :  { %426 = shalt.err (!%p423_p7)
}
  0x11   :  { %s500_s7 = smov 128   ;;  %s501_s8 = smov 8  }
  0x12   :  { %35 = dma.hbm_to_vmem [thread:$0]  %s603_s1, 1024, %s30_s22, [#allocation6], %s500_s7, %s500_s7, %s501_s8  }
  0x13   :  { %s502_s11 = smov [#allocation2]   ;;  %s503_s13 = smov [#allocation7]  }
  0x14   :  { %s20_s12 = sshll.u32 %s502_s11, 4  ;;  %s43_s14 = sshll.u32 %s503_s13, 4  ;;  %s21_s12 = int_to_ptr.vmem [resolvable:$true] %s20_s12  ;;  %s44_s14 = int_to_ptr.vmem [resolvable:$true] %s43_s14 }
  0x15   :  { %s427_s17 = scalar_lea.hbm %s602_s0, 64 }
  0x16   :  { %p428_p8 = scmp.ne.s32.totalorder %s602_s0, %s427_s17  ;;  %p431_p9 = scmp.lt.u32.totalorder %s427_s17, %s602_s0 }
  0x18   :  { %p433_p10 = pnand %p431_p9, %p428_p8 }
  0x1a   :  { %436 = shalt.err (!%p433_p10)
}
  0x1b   :  { %s437_s1 = scalar_lea.vmem %s21_s12, 64  ;;  %p442_p12 = scmp.lt.s32.totalorder %s21_s12, %s21_s12 }
  0x1c   :  { %p438_p11 = scmp.ne.s32.totalorder %s21_s12, %s437_s1  ;;  %p443_p13 = scmp.lt.s32.totalorder %s437_s1, %s437_s1 }
  0x1e   :  { %p444_p0 = por %p443_p13, %p442_p12 }
  0x20   :  { %p445_p1 = pnand %p444_p0, %p438_p11 }
  0x22   :  { %448 = shalt.err (!%p445_p1)
}
  0x23   :  { %23 = dma.hbm_to_vmem [thread:$0]  %s602_s0, 64, %s21_s12, [#allocation3]  }
  0x24   :  { %s449_s26 = scalar_lea.hbm %s605_s3, 1024 }
  0x25   :  { %p450_p2 = scmp.ne.s32.totalorder %s605_s3, %s449_s26  ;;  %p453_p3 = scmp.lt.u32.totalorder %s449_s26, %s605_s3 }
  0x27   :  { %p455_p4 = pnand %p453_p3, %p450_p2 }
  0x29   :  { %458 = shalt.err (!%p455_p4)
}
  0x2a   :  { %s459_s7 = scalar_lea.vmem %s44_s14, 1024  ;;  %p464_p6 = scmp.lt.s32.totalorder %s44_s14, %s44_s14 }
  0x2b   :  { %p460_p5 = scmp.ne.s32.totalorder %s44_s14, %s459_s7  ;;  %p465_p7 = scmp.lt.s32.totalorder %s459_s7, %s459_s7 }
  0x2d   :  { %p466_p8 = por %p465_p7, %p464_p6 }
  0x2f   :  { %p467_p9 = pnand %p466_p8, %p460_p5 }
  0x31   :  { %470 = shalt.err (!%p467_p9)
}
  0x32   :  { %s504_s0 = smov 64   ;;  %s505_s8 = smov 4  }
  0x33   :  { %49 = dma.hbm_to_vmem [thread:$0]  %s605_s3, 1024, %s44_s14, [#allocation6], %s504_s0, %s504_s0, %s505_s8  }
  0x34   :  { %493 = dma.done.wait [#allocation3], 64  }
  0x35   :  { %494 = vsyncadd [#allocation3], 4294967232 }
  0x36   :  { %495 = dma.done.wait [#allocation6], 2048  }
  0x37   :  { %496 = vsyncadd [#allocation6], 4294965248  ;;  %v506_v0 = vmov 0   ;;  %v381_v1 = vld [vmem:[#allocation5 + $0x4] ss:$8 sps:$4 sm:$0xff]   ;;  %vm125_vm0 = vcmask 523264   ;;  %v75_v19 = vlaneseq }
  0x38   :  { %161 = vmatprep.mubr.bf16.mxu0 %v506_v0  ;;  %v383_v2 = vld [vmem:[#allocation5] ss:$8 sps:$4 sm:$0xff]   ;;  %129 = vmatprep.subr.bf16.mxu0 %v381_v1  ;;  %v384_v3 = vld [vmem:[#allocation5 + $0x14] ss:$8 sps:$4 sm:$0xff]   ;;  %v386_v4 = vld [vmem:[#allocation5 + $0x10] ss:$8 sps:$4 sm:$0xff]  }
  0x39   :  { %130 = vmatpush1.bf16.msra.mxu0 %v383_v2  ;;  %v387_v5 = vld [vmem:[#allocation5 + $0x24] ss:$8 sps:$4 sm:$0xff]   ;;  %v389_v6 = vld [vmem:[#allocation5 + $0x20] ss:$8 sps:$4 sm:$0xff]   ;;  %v390_v7 = vld [vmem:[#allocation5 + $0x34] ss:$8 sps:$4 sm:$0xff]  }
  0x3a   :  { %131 = vmatprep.subr.bf16.mxu0 %v384_v3  ;;  %v392_v8 = vld [vmem:[#allocation5 + $0x30] ss:$8 sps:$4 sm:$0xff]   ;;  %v64_v9 = vld [vmem:[#allocation2] sm:$0xf]  ;;  %v393_v10 = vld [vmem:[#allocation7] sm:$0xff]   ;;  %v507_v11 = vmov 0.0  }
  0x3b   :  { %350 = vmatprep.subr.bf16.mxu1 %v507_v11  ;;  %v394_v12 = vld [vmem:[#allocation7 + $0x8] sm:$0xff]   ;;  %v395_v13 = vld [vmem:[#allocation7 + $0x10] sm:$0xff]   ;;  %v396_v14 = vld [vmem:[#allocation7 + $0x18] sm:$0xff]   ;;  %vm508_vm1 = vmmov 0   ;;  %v76_v20 = vshrl.u32 %v75_v19, 7  ;;  %s509_s15 = smov [#allocation8]  }
  0x3c   :  { %351 = vmatpush3.bf16.msra.mxu1 %v393_v10  ;;  %v397_v15 = vld [vmem:[#allocation7 + $0x20] sm:$0xff]   ;;  %v398_v16 = vld [vmem:[#allocation7 + $0x28] sm:$0xff]   ;;  %v399_v17 = vld [vmem:[#allocation7 + $0x30] sm:$0xff]   ;;  %366 = vmatprep.mubr.msk.bf16.mxu1 %vm508_vm1, %v507_v11 }
  0x3d   :  { %132 = vmatpush1.bf16.msra.mxu0 %v386_v4  ;;  %352 = vmatprep.subr.bf16.mxu1 %v507_v11  ;;  %v400_v18 = vld [vmem:[#allocation7 + $0x38] sm:$0xff]   ;;  %v81_v21 = vsub.s32 1, %v76_v20  ;;  %v77_v38 = vsub.s32 0, %v76_v20 }
  0x3e   :  { %133 = vmatprep.subr.bf16.mxu0 %v387_v5  ;;  %v73_v22 = vld [vmem:[%s604_s2] sm:$0x3] }
  0x3f   :  { %v82_v23 = vrot.slane %v73_v22, %v81_v21  ;;  %v188_v41 = vld [vmem:[%s607_s5] sm:$0xf]  ;;  %v78_v45 = vrot.slane %v73_v22, %v77_v38  ;;  %s311_s5 = sshll.u32 %s509_s15, 4  ;;  %s312_s5 = int_to_ptr.vmem [resolvable:$true] %s311_s5 }
  0x40   :  { %353 = vmatpush3.bf16.msra.mxu1 %v394_v12  ;;  %v189_v47 = vunpack.c.l.bf16 %v188_v41  ;;  %v332_v54 = vld [vmem:[%s606_s4] ss:$0 sm:$0xff]  ;;  %s471_s16 = scalar_lea.vmem %s312_s5, 128  ;;  %p476_p11 = scmp.lt.s32.totalorder %s312_s5, %s312_s5 }
  0x41   :  { %134 = vmatpush1.bf16.msra.mxu0 %v389_v6  ;;  %354 = vmatprep.subr.bf16.mxu1 %v507_v11  ;;  %p472_p10 = scmp.ne.s32.totalorder %s312_s5, %s471_s16  ;;  %p477_p12 = scmp.lt.s32.totalorder %s471_s16, %s471_s16 }
  0x42   :  { %135 = vmatprep.subr.bf16.mxu0 %v390_v7 }
  0x43   :  { %p478_p13 = por %p477_p12, %p476_p11 }
  0x44   :  { %355 = vmatpush3.bf16.msra.mxu1 %v395_v13 }
  0x45   :  { %136 = vmatpush1.bf16.msra.mxu0 %v392_v8  ;;  %356 = vmatprep.subr.bf16.mxu1 %v507_v11  ;;  %p479_p0 = pnand %p478_p13, %p472_p10 }
  0x48   :  { %329 = vmatmul.mubr.msk.bf16.vlgmr.msra.gmra.mrb[0].mxu0 %vm125_vm0, %v64_v9  ;;  %357 = vmatpush3.bf16.msra.mxu1 %v396_v14 }
  0x49   :  { %358 = vmatprep.subr.bf16.mxu1 %v507_v11 }
  0x4c   :  { %359 = vmatpush3.bf16.msra.mxu1 %v397_v15 }
  0x4d   :  { %360 = vmatprep.subr.bf16.mxu1 %v507_v11 }
  0x50   :  { %361 = vmatpush3.bf16.msra.mxu1 %v398_v16 }
  0x51   :  { %362 = vmatprep.subr.bf16.mxu1 %v507_v11 }
  0x54   :  { %363 = vmatpush3.bf16.msra.mxu1 %v399_v17 }
  0x55   :  { %364 = vmatprep.subr.bf16.mxu1 %v507_v11 }
  0x58   :  { %365 = vmatpush3.bf16.msra.mxu1 %v400_v18 }
 0x11b   :  { %v163_v24 = vpop.f32.mrb[0].mxu0 }
 0x11c   :  { %v165_v25 = vpop.f32.mrb[1].mxu0  ;;  %v164_v50 = vadd.f32 %v163_v24, %v78_v45 }
 0x11d   :  { %v166_v26 = vadd.f32 %v165_v25, %v82_v23  ;;  %v167_v27 = vpop.f32.mrb[2].mxu0 }
 0x11e   :  { %v168_v28 = vpop.f32.mrb[3].mxu0 }
 0x11f   :  { %v170_v29 = vmax.f32 %v166_v26, 0.0  ;;  %v331_v39 = vadd.f32 -5.0, %v166_v26 }
 0x121   :  { %v330_v30 = vadd.f32 -5.0, %v170_v29  ;;  %v173_v46 = vmax.f32 %v331_v39, 0.0 }
 0x123   :  { %v174_v31 = vand.u32 2147483647, %v330_v30 }
 0x125   :  { %v175_v32 = vsub.f32 0.0, %v174_v31 }
 0x127   :  { %v176_v33 = vmul.f32 1.442695, %v175_v32 }
 0x129   :  { %401 = vpow2.f32 %v176_v33 }
 0x133   :  { %v402_v34 = vpop.eup %401 }
 0x134   :  { %v178_v35 = vadd.f32 1.0, %v402_v34  ;;  %v181_v36 = vmul.f32 -0.5, %v402_v34  ;;  %v184_v40 = vand.u32 2147483647, %v402_v34 }
 0x136   :  { %403 = vlog2.f32 %v178_v35  ;;  %v182_v37 = vadd.f32 1.0, %v181_v36  ;;  %vm185_vm2 = vcmp.lt.f32.partialorder %v184_v40, 0.0004427343 }
 0x138   :  { %v183_v44 = vmul.f32 %v402_v34, %v182_v37 }
 0x140   :  { %v404_v42 = vpop.eup %403 }
 0x141   :  { %v180_v43 = vmul.f32 0.6931472, %v404_v42 }
 0x143   :  { %v186_v48 = vsel %vm185_vm2, %v183_v44, %v180_v43 }
 0x144   :  { %v187_v49 = vadd.f32 %v186_v48, %v173_v46 }
 0x146   :  { %v190_v51 = vmul.f32 %v189_v47, %v187_v49 }
 0x148   :  { %v191_v52 = vadd.f32 %v190_v51, %v164_v50 }
 0x14a   :  { %v192_v53 = vpack.c.bf16 %v191_v52, %v191_v52 }
 0x14c   :  { %367 = vmatmul.mubr.bf16.vlgmr.msra.gmra.mrb[0].mxu1 %v192_v53 }
 0x21f   :  { %v298_v55 = vpop.f32.mrb[0].mxu1 }
 0x220   :  { %v299_v56 = vadd.f32 %v332_v54, %v298_v55  ;;  %v368_v57 = vpop.f32.mrb[1].mxu1 }
 0x221   :  { %v301_v58 = vpop.f32.mrb[2].mxu1 }
 0x222   :  { %304 = vst [vmem:[#allocation8] sm:$0xff] %v299_v56  ;;  %v369_v59 = vpop.f32.mrb[3].mxu1 }
 0x223   :  { %482 = shalt.err (!%p479_p0)
}
 0x224   :  { %s483_s4 = scalar_lea.hbm %s608_s6, 128 }
 0x225   :  { %p484_p1 = scmp.ne.s32.totalorder %s608_s6, %s483_s4  ;;  %p487_p2 = scmp.lt.u32.totalorder %s483_s4, %s608_s6 }
 0x227   :  { %p489_p3 = pnand %p487_p2, %p484_p1 }
 0x229   :  { %492 = shalt.err (!%p489_p3)
}
 0x22a   :  { %314 = dma.vmem_to_hbm [thread:$0]  %s312_s5, 128, %s608_s6, [#allocation4]  }
 0x22b   :  { %497 = dma.done.wait [#allocation4], 128  }
 0x22c   :  { %498 = vsyncadd [#allocation4], 4294967168 }
 0x22d   :  { %318 = vsyncpa [#allocation3], 1 }
 0x22e   :  { %319 = vsyncpa [#allocation6], 1 }
 0x22f   :  { %320 = vsyncpa [#allocation4], 1 }

</bundles_post_ra>
